<compile_context>
chip_gen: v7x
topology: tpu7x:2x2x1
jax: 0.10.0
libtpu: 0.0.40
codegen_flags: <defaults>
</compile_context>

<pallas_src>
import functools
from typing import NamedTuple

import jax
import jax.numpy as jnp
from jax.experimental import pallas as pl
from jax.experimental.pallas import tpu as pltpu

LANE = 128
SUBLANE = 8


def _round_up(x, m):
    return (x + m - 1) // m * m


class Dims(NamedTuple):
    E: int
    H: int
    V: int
    Ep: int
    Hp: int
    Vp: int
    TV: int


# ----------------------------------------------------------------------------
# Kernels
# ----------------------------------------------------------------------------
def _fused_lstm_cell(xh_bf16, c, w_gates, b_gates):
    """nn.LSTMCell step with fused [x|h] matmul. Gate order i,f,g,o; each gate
    occupies a lane-aligned H_pad-wide column block of the 4*H_pad gate slab."""
    hp = c.shape[-1]
    gates = jnp.dot(xh_bf16, w_gates, preferred_element_type=jnp.float32) + b_gates
    i_g = jax.nn.sigmoid(gates[:, 0 * hp:1 * hp])
    f_g = jax.nn.sigmoid(gates[:, 1 * hp:2 * hp])
    g_g = jnp.tanh(gates[:, 2 * hp:3 * hp])
    o_g = jax.nn.sigmoid(gates[:, 3 * hp:4 * hp])
    c_new = f_g * c + i_g * g_g
    h_new = o_g * jnp.tanh(c_new)
    return h_new, c_new


def _decoder_text_kernel(xh_ref, c_ref, wg_ref, bg_ref, wl_ref, bl_ref,
                         out_ref, h_out_ref, c_out_ref,
                         logits_sc, h_bf16_sc, m_sc, l_sc, lse_sc):
    """Grid (2, nv).  Sweep s=0: LSTM cell (tile 0 only), per-tile logits into
    a VMEM slab + online max/sum-exp, LSE on the last tile.  Sweep s=1: write
    the normalized log-probs tiles (the only (B, Vp) HBM output)."""
    s = pl.program_id(0)
    v = pl.program_id(1)

    @pl.when(jnp.logical_and(s == 0, v == 0))
    def _():
        h_new, c_new = _fused_lstm_cell(xh_ref[...], c_ref[...],
                                        wg_ref[...], bg_ref[...])
        h_out_ref[...] = h_new
        c_out_ref[...] = c_new
        h_bf16_sc[...] = h_new.astype(jnp.bfloat16)
        m_sc[...] = jnp.full(m_sc.shape, -jnp.inf, m_sc.dtype)
        l_sc[...] = jnp.zeros(l_sc.shape, l_sc.dtype)

    @pl.when(s == 0)
    def _():
        # Output-projection tile: bf16 MXU matmul, f32 accumulate, f32 bias.
        logits = (jnp.dot(h_bf16_sc[...], wl_ref[...],
                          preferred_element_type=jnp.float32) + bl_ref[...])
        logits_sc[v] = logits                       # resident VMEM slab

        # Online log-sum-exp accumulation (f32).
        m_prev = m_sc[...]
        m_new = jnp.maximum(m_prev, jnp.max(logits, axis=-1, keepdims=True))
        l_sc[...] = (l_sc[...] * jnp.exp(m_prev - m_new)
                     + jnp.sum(jnp.exp(logits - m_new), axis=-1, keepdims=True))
        m_sc[...] = m_new

        @pl.when(v == pl.num_programs(1) - 1)
        def _():
            lse_sc[...] = m_sc[...] + jnp.log(l_sc[...])

    @pl.when(s == 1)
    def _():
        # Lane-dense normalized write; the only full-vocab HBM output.
        out_ref[...] = (logits_sc[v] - lse_sc[...]).astype(out_ref.dtype)


def _decoder_image_kernel(xh_ref, c_ref, wg_ref, bg_ref, h_out_ref, c_out_ref):
    h_new, c_new = _fused_lstm_cell(xh_ref[...], c_ref[...],
                                    wg_ref[...], bg_ref[...])
    h_out_ref[...] = h_new
    c_out_ref[...] = c_new


_VMEM_SPEC = functools.partial(pl.BlockSpec, memory_space=pltpu.MemorySpace.VMEM)


# ----------------------------------------------------------------------------
# Parameters (raw PyTorch-layout + one-time kernel-layout preparation)
# ----------------------------------------------------------------------------
def init_raw_params(key, embedding_dim, vocab_size, hidden_size):
    ks = jax.random.split(key, 7)
    scale = 0.1
    return {
        "embedding": scale * jax.random.normal(ks[0], (vocab_size, embedding_dim), jnp.float32),
        "w_ih": scale * jax.random.normal(ks[1], (4 * hidden_size, embedding_dim), jnp.float32),
        "w_hh": scale * jax.random.normal(ks[2], (4 * hidden_size, hidden_size), jnp.float32),
        "b_ih": scale * jax.random.normal(ks[3], (4 * hidden_size,), jnp.float32),
        "b_hh": scale * jax.random.normal(ks[4], (4 * hidden_size,), jnp.float32),
        "w_lin": scale * jax.random.normal(ks[5], (vocab_size, hidden_size), jnp.float32),
        "b_lin": scale * jax.random.normal(ks[6], (vocab_size,), jnp.float32),
    }


def prepare_kernel_params(raw, vocab_tile=1024):
    """One-time glue: pad/transpose/fuse weights into kernel-friendly layout.
    `vocab_tile` is a tunable (sweep 1024-2048 at production vocab sizes)."""
    V, E = raw["embedding"].shape
    H = raw["w_hh"].shape[1]
    Ep = _round_up(E, LANE)
    Hp = _round_up(H, LANE)
    TV = min(vocab_tile, _round_up(V, LANE))   # lane-dense vocab tile
    Vp = _round_up(V, TV)

    # Embedding table with feature axis zero-padded (gather stays in JAX glue).
    emb = jnp.zeros((V, Ep), jnp.float32).at[:, :E].set(raw["embedding"])

    # Fused gate weight: per-gate blocks padded to H_pad, input axes padded,
    # pre-transposed to (E_pad + H_pad, 4*H_pad), stored bf16.
    w_ih = raw["w_ih"].reshape(4, H, E)
    w_hh = raw["w_hh"].reshape(4, H, H)
    w_ih_p = jnp.zeros((4, Hp, Ep), jnp.float32).at[:, :H, :E].set(w_ih)
    w_hh_p = jnp.zeros((4, Hp, Hp), jnp.float32).at[:, :H, :H].set(w_hh)
    w_gates = jnp.concatenate(
        [w_ih_p.reshape(4 * Hp, Ep), w_hh_p.reshape(4 * Hp, Hp)], axis=1).T
    b = (raw["b_ih"] + raw["b_hh"]).reshape(4, H)
    b_gates = jnp.zeros((4, Hp), jnp.float32).at[:, :H].set(b).reshape(1, 4 * Hp)

    # Output projection, pre-transposed + padded, bf16.  Padded vocab columns
    # get a very negative bias so exp() contributes ~0 to the softmax sum.
    w_lin_t = jnp.zeros((Hp, Vp), jnp.float32).at[:H, :V].set(raw["w_lin"].T)
    b_lin = jnp.full((1, Vp), -1e9, jnp.float32).at[0, :V].set(raw["b_lin"])

    params = {
        "embedding": emb,
        "w_gates": w_gates.astype(jnp.bfloat16),
        "b_gates": b_gates,
        "w_lin_t": w_lin_t.astype(jnp.bfloat16),
        "b_lin": b_lin,
    }
    return params, Dims(E=E, H=H, V=V, Ep=Ep, Hp=Hp, Vp=Vp, TV=TV)


# ----------------------------------------------------------------------------
# Forward wrapper (mirrors LSTMDecoder.forward)
# ----------------------------------------------------------------------------
def lstm_decoder_forward(params, input_tensor, hidden_state, cell_state, *,
                         dims, is_image=False, out_dtype=jnp.float32):
    E, H, V = dims.E, dims.H, dims.V
    Ep, Hp, Vp, TV = dims.Ep, dims.Hp, dims.Vp, dims.TV

    if is_image:
        # unsqueeze(0) + pad batch to the 8-row sublane granule, features to Ep.
        feat = jnp.zeros((SUBLANE, Ep), jnp.float32).at[0, :E].set(input_tensor)
        h = jnp.zeros((SUBLANE, Hp), jnp.float32).at[:1, :H].set(hidden_state)
        c = jnp.zeros((SUBLANE, Hp), jnp.float32).at[:1, :H].set(cell_state)
        xh = jnp.concatenate([feat, h], axis=1).astype(jnp.bfloat16)
        h_new, c_new = pl.pallas_call(
            _decoder_image_kernel,
            out_shape=(jax.ShapeDtypeStruct((SUBLANE, Hp), jnp.float32),
                       jax.ShapeDtypeStruct((SUBLANE, Hp), jnp.float32)),
            in_specs=[_VMEM_SPEC()] * 4,
            out_specs=(_VMEM_SPEC(), _VMEM_SPEC()),
        )(xh, c, params["w_gates"], params["b_gates"])
        return h_new[:1, :H], c_new[:1, :H]

    # ---- text path ----
    embed = params["embedding"][input_tensor]        # (B, Ep) gather, JAX glue
    B = embed.shape[0]
    # Pad batch to the sublane granule.  (Real MXU-utilization wins come from
    # the caller batching more rows - beams / multiple tokens - not from zero
    # padding; see review item #3.)
    Bp = _round_up(max(B, SUBLANE), SUBLANE)
    pad_b = Bp - B
    if pad_b:
        embed = jnp.pad(embed, ((0, pad_b), (0, 0)))
    h = jnp.pad(hidden_state, ((0, pad_b), (0, Hp - H)))
    c = jnp.pad(cell_state, ((0, pad_b), (0, Hp - H)))
    xh = jnp.concatenate([embed, h], axis=1).astype(jnp.bfloat16)

    nv = Vp // TV
    const = lambda s, v: (0, 0)
    # W_lin/b_lin only stream during sweep 0; pinned on the last tile in sweep 1
    # so the second sweep does not re-DMA the projection weights.
    wlin_map = lambda s, v: (0, v + s * (nv - 1 - v))
    # Output pinned at tile 0 during sweep 0 (no writeback), streamed in sweep 1.
    out_map = lambda s, v: (0, v * s)

    out_itemsize = jnp.dtype(out_dtype).itemsize
    flops = 2 * Bp * (Ep + Hp) * 4 * Hp + 2 * Bp * Hp * Vp
    transcendentals = Bp * (5 * Hp + Vp)
    bytes_accessed = (Bp * (Ep + Hp) * 2 + Bp * Hp * 4            # xh, c
                      + (Ep + Hp) * 4 * Hp * 2 + 4 * Hp * 4       # gate W, b
                      + Hp * Vp * 2 + Vp * 4                      # W_lin, b_lin
                      + Bp * Vp * out_itemsize + 2 * Bp * Hp * 4)  # outputs
    # Double-buffered pipeline buffers + resident scratch, with headroom.
    vmem_working = 2 * (Bp * (Ep + Hp) * 2 + Bp * Hp * 4
                        + (Ep + Hp) * 4 * Hp * 2 + 4 * Hp * 4
                        + Hp * TV * 2 + TV * 4
                        + Bp * TV * out_itemsize + 2 * Bp * Hp * 4)
    vmem_working += nv * Bp * TV * 4 + Bp * Hp * 2 + 3 * Bp * LANE * 4
    vmem_limit = int(min(max(2 * vmem_working, 32 * 2**20), 64 * 2**20))

    logp, h_new, c_new = pl.pallas_call(
        _decoder_text_kernel,
        out_shape=(
            jax.ShapeDtypeStruct((Bp, Vp), out_dtype),    # log-probs (padded)
            jax.ShapeDtypeStruct((Bp, Hp), jnp.float32),  # new hidden (padded)
            jax.ShapeDtypeStruct((Bp, Hp), jnp.float32),  # new cell   (padded)
        ),
        grid_spec=pltpu.PrefetchScalarGridSpec(
            num_scalar_prefetch=0,
            grid=(2, nv),
            in_specs=[
                pl.BlockSpec((Bp, Ep + Hp), const),           # [x|h] bf16
                pl.BlockSpec((Bp, Hp), const),                # c
                pl.BlockSpec((Ep + Hp, 4 * Hp), const),       # fused gate W
                pl.BlockSpec((1, 4 * Hp), const),             # fused gate b
                pl.BlockSpec((Hp, TV), wlin_map),             # W_lin tile
                pl.BlockSpec((1, TV), wlin_map),              # b_lin tile
            ],
            out_specs=(
                pl.BlockSpec((Bp, TV), out_map),              # log-probs tile
                pl.BlockSpec((Bp, Hp), const),                # h_out
                pl.BlockSpec((Bp, Hp), const),                # c_out
            ),
            scratch_shapes=[
                pltpu.VMEM((nv, Bp, TV), jnp.float32),        # resident logits slab
                pltpu.VMEM((Bp, Hp), jnp.bfloat16),           # h (bf16) MXU operand
                pltpu.VMEM((Bp, 1), jnp.float32),             # running max
                pltpu.VMEM((Bp, 1), jnp.float32),             # running sum-exp
                pltpu.VMEM((Bp, 1), jnp.float32),             # final LSE
            ],
        ),
        # Both axes carry resident state (cell result, online LSE, logits slab).
        compiler_params=pltpu.CompilerParams(
            dimension_semantics=("arbitrary", "arbitrary"),
            vmem_limit_bytes=vmem_limit),
        cost_estimate=pl.CostEstimate(
            flops=flops, transcendentals=transcendentals,
            bytes_accessed=bytes_accessed),
    )(xh, c, params["w_gates"], params["b_gates"],
      params["w_lin_t"], params["b_lin"])

    return logp[:B, :V], h_new[:B, :H], c_new[:B, :H]


# ----------------------------------------------------------------------------
# Pure-JAX f32 reference (PyTorch semantics) for verification
# ----------------------------------------------------------------------------
def _ref_cell(raw, x, h, c):
    gates = (x @ raw["w_ih"].T + raw["b_ih"] + h @ raw["w_hh"].T + raw["b_hh"])
    H = h.shape[-1]
    i_g = jax.nn.sigmoid(gates[:, 0:H])
    f_g = jax.nn.sigmoid(gates[:, H:2 * H])
    g_g = jnp.tanh(gates[:, 2 * H:3 * H])
    o_g = jax.nn.sigmoid(gates[:, 3 * H:4 * H])
    c_new = f_g * c + i_g * g_g
    h_new = o_g * jnp.tanh(c_new)
    return h_new, c_new


def reference_text(raw, input_ids, h, c):
    embed = raw["embedding"][input_ids]
    h_new, c_new = _ref_cell(raw, embed, h, c)
    logits = h_new @ raw["w_lin"].T + raw["b_lin"]
    return jax.nn.log_softmax(logits, axis=1), h_new, c_new


def reference_image(raw, feat, h, c):
    return _ref_cell(raw, feat[None, :], h, c)


# ----------------------------------------------------------------------------
# Main
# ----------------------------------------------------------------------------
if __name__ == "__main__":
    embedding_dim = 32
    vocab_size = 64
    hidden_size = 32
    batch = 8

    key = jax.random.PRNGKey(0)
    pkey, ikey = jax.random.split(key)
    raw = init_raw_params(pkey, embedding_dim, vocab_size, hidden_size)
    params, dims = prepare_kernel_params(raw)

    fwd = jax.jit(lstm_decoder_forward,
                  static_argnames=("dims", "is_image", "out_dtype"))

    # text path
    input_ids = jax.random.randint(ikey, (batch,), 0, vocab_size, dtype=jnp.int32)
    h0 = jnp.zeros((batch, hidden_size), jnp.float32)
    c0 = jnp.zeros((batch, hidden_size), jnp.float32)
    out, h1, c1 = fwd(params, input_ids, h0, c0, dims=dims, is_image=False)
    jax.block_until_ready((out, h1, c1))

    # image path (batch-1 feature vector, unsqueeze(0) inside)
    feat = 0.1 * jax.random.normal(jax.random.PRNGKey(1), (embedding_dim,), jnp.float32)
    h_img, c_img = fwd(params, feat,
                       jnp.zeros((1, hidden_size), jnp.float32),
                       jnp.zeros((1, hidden_size), jnp.float32),
                       dims=dims, is_image=True)
    jax.block_until_ready((h_img, c_img))

    # verify against pure-JAX f32 reference (kernel uses bf16 matmul operands)
    ref_out, ref_h, ref_c = reference_text(raw, input_ids, h0, c0)
    assert jnp.allclose(out, ref_out, atol=1e-2, rtol=1e-2)
    assert jnp.allclose(h1, ref_h, atol=1e-2, rtol=1e-2)
    assert jnp.allclose(c1, ref_c, atol=1e-2, rtol=1e-2)

    ref_hi, ref_ci = reference_image(raw, feat,
                                     jnp.zeros((1, hidden_size), jnp.float32),
                                     jnp.zeros((1, hidden_size), jnp.float32))
    assert jnp.allclose(h_img, ref_hi, atol=1e-2, rtol=1e-2)
    assert jnp.allclose(c_img, ref_ci, atol=1e-2, rtol=1e-2)

    print("KERNEL_OK")
</pallas_src>

<mosaic_0001>
module attributes {stable_mosaic.version = 11 : i64} {
  func.func @_decoder_text_kernel(%arg0: i32, %arg1: i32, %arg2: memref<8x256xbf16, #tpu.memory_space<vmem>>, %arg3: memref<8x128xf32, #tpu.memory_space<vmem>>, %arg4: memref<256x512xbf16, #tpu.memory_space<vmem>>, %arg5: memref<1x512xf32, #tpu.memory_space<vmem>>, %arg6: memref<128x128xbf16, #tpu.memory_space<vmem>>, %arg7: memref<1x128xf32, #tpu.memory_space<vmem>>, %arg8: memref<8x128xf32, #tpu.memory_space<vmem>>, %arg9: memref<8x128xf32, #tpu.memory_space<vmem>>, %arg10: memref<8x128xf32, #tpu.memory_space<vmem>>, %arg11: memref<1x8x128xf32, #tpu.memory_space<vmem>>, %arg12: memref<8x128xbf16, #tpu.memory_space<vmem>>, %arg13: memref<8x1xf32, #tpu.memory_space<vmem>>, %arg14: memref<8x1xf32, #tpu.memory_space<vmem>>, %arg15: memref<8x1xf32, #tpu.memory_space<vmem>>) attributes {dimension_semantics = [#tpu.dimension_semantics<arbitrary>, #tpu.dimension_semantics<arbitrary>], iteration_bounds = array<i64: 2, 1>, scalar_prefetch = 0 : i64, scratch_operands = 5 : i64, tpu.core_type = #tpu.core_type<tc>, window_params = [{pipeline_mode = #tpu.pipeline_mode<synchronous>, transform_indices = @transform_0, window_bounds = array<i64: 8, 256>}, {pipeline_mode = #tpu.pipeline_mode<synchronous>, transform_indices = @transform_1, window_bounds = array<i64: 8, 128>}, {pipeline_mode = #tpu.pipeline_mode<synchronous>, transform_indices = @transform_2, window_bounds = array<i64: 256, 512>}, {pipeline_mode = #tpu.pipeline_mode<synchronous>, transform_indices = @transform_3, window_bounds = array<i64: 1, 512>}, {transform_indices = @transform_4, window_bounds = array<i64: 128, 128>}, {transform_indices = @transform_5, window_bounds = array<i64: 1, 128>}, {transform_indices = @transform_6, window_bounds = array<i64: 8, 128>}, {pipeline_mode = #tpu.pipeline_mode<synchronous>, transform_indices = @transform_7, window_bounds = array<i64: 8, 128>}, {pipeline_mode = #tpu.pipeline_mode<synchronous>, transform_indices = @transform_8, window_bounds = array<i64: 8, 128>}]} {
    %c0_i32 = arith.constant 0 : i32
    %0 = arith.cmpi eq, %arg0, %c0_i32 : i32
    %c0_i32_0 = arith.constant 0 : i32
    %1 = arith.cmpi eq, %arg1, %c0_i32_0 : i32
    %2 = arith.andi %0, %1 : i1
    %3 = arith.extui %2 : i1 to i32
    %c0_i32_1 = arith.constant 0 : i32
    %4 = arith.cmpi ne, %3, %c0_i32_1 : i32
    scf.if %4 {
      %c0 = arith.constant 0 : index
      %c0_5 = arith.constant 0 : index
      %11 = vector.load %arg2[%c0, %c0_5] : memref<8x256xbf16, #tpu.memory_space<vmem>>, vector<8x256xbf16>
      %c0_6 = arith.constant 0 : index
      %c0_7 = arith.constant 0 : index
      %12 = vector.load %arg3[%c0_6, %c0_7] : memref<8x128xf32, #tpu.memory_space<vmem>>, vector<8x128xf32>
      %c0_8 = arith.constant 0 : index
      %c0_9 = arith.constant 0 : index
      %13 = vector.load %arg4[%c0_8, %c0_9] : memref<256x512xbf16, #tpu.memory_space<vmem>>, vector<256x512xbf16>
      %c0_10 = arith.constant 0 : index
      %c0_11 = arith.constant 0 : index
      %14 = vector.load %arg5[%c0_10, %c0_11] : memref<1x512xf32, #tpu.memory_space<vmem>>, vector<1x512xf32>
      %cst = arith.constant dense<0.000000e+00> : vector<8x512xf32>
      %15 = tpu.matmul %11, %13, %cst {dimension_numbers = #tpu.dot_dimension_numbers<[1], [0], [0], [1], [0, 0, 1, 1], [], []>} : vector<8x256xbf16>, vector<256x512xbf16>, vector<8x512xf32> -> vector<8x512xf32>
      %16 = vector.broadcast %14 : vector<1x512xf32> to vector<8x512xf32>
      %17 = arith.addf %15, %16 : vector<8x512xf32>
      %18 = vector.extract_strided_slice %17 {offsets = [0, 0], sizes = [8, 128], strides = [1, 1]} : vector<8x512xf32> to vector<8x128xf32>
      %19 = arith.negf %18 : vector<8x128xf32>
      %20 = math.exp %19 : vector<8x128xf32>
      %cst_12 = arith.constant 1.000000e+00 : f32
      %21 = vector.broadcast %cst_12 : f32 to vector<8x128xf32>
      %22 = arith.addf %21, %20 : vector<8x128xf32>
      %23 = arith.divf %21, %22 : vector<8x128xf32>
      %24 = vector.extract_strided_slice %17 {offsets = [0, 128], sizes = [8, 128], strides = [1, 1]} : vector<8x512xf32> to vector<8x128xf32>
      %25 = arith.negf %24 : vector<8x128xf32>
      %26 = math.exp %25 : vector<8x128xf32>
      %cst_13 = arith.constant 1.000000e+00 : f32
      %27 = vector.broadcast %cst_13 : f32 to vector<8x128xf32>
      %28 = arith.addf %27, %26 : vector<8x128xf32>
      %29 = arith.divf %27, %28 : vector<8x128xf32>
      %30 = vector.extract_strided_slice %17 {offsets = [0, 256], sizes = [8, 128], strides = [1, 1]} : vector<8x512xf32> to vector<8x128xf32>
      %31 = math.tanh %30 : vector<8x128xf32>
      %32 = vector.extract_strided_slice %17 {offsets = [0, 384], sizes = [8, 128], strides = [1, 1]} : vector<8x512xf32> to vector<8x128xf32>
      %33 = arith.negf %32 : vector<8x128xf32>
      %34 = math.exp %33 : vector<8x128xf32>
      %cst_14 = arith.constant 1.000000e+00 : f32
      %35 = vector.broadcast %cst_14 : f32 to vector<8x128xf32>
      %36 = arith.addf %35, %34 : vector<8x128xf32>
      %37 = arith.divf %35, %36 : vector<8x128xf32>
      %38 = arith.mulf %29, %12 : vector<8x128xf32>
      %39 = arith.mulf %23, %31 : vector<8x128xf32>
      %40 = arith.addf %38, %39 : vector<8x128xf32>
      %41 = math.tanh %40 : vector<8x128xf32>
      %42 = arith.mulf %37, %41 : vector<8x128xf32>
      %c0_15 = arith.constant 0 : index
      %c0_16 = arith.constant 0 : index
      %43 = vector.load %arg9[%c0_15, %c0_16] : memref<8x128xf32, #tpu.memory_space<vmem>>, vector<8x128xf32>
      tpu.vector_store %arg9[%c0_15, %c0_16], %42 {strides = array<i32>} : memref<8x128xf32, #tpu.memory_space<vmem>>, vector<8x128xf32>,
      %c0_17 = arith.constant 0 : index
      %c0_18 = arith.constant 0 : index
      %44 = vector.load %arg10[%c0_17, %c0_18] : memref<8x128xf32, #tpu.memory_space<vmem>>, vector<8x128xf32>
      tpu.vector_store %arg10[%c0_17, %c0_18], %40 {strides = array<i32>} : memref<8x128xf32, #tpu.memory_space<vmem>>, vector<8x128xf32>,
      %45 = arith.truncf %42 : vector<8x128xf32> to vector<8x128xbf16>
      %c0_19 = arith.constant 0 : index
      %c0_20 = arith.constant 0 : index
      %46 = vector.load %arg12[%c0_19, %c0_20] : memref<8x128xbf16, #tpu.memory_space<vmem>>, vector<8x128xbf16>
      tpu.vector_store %arg12[%c0_19, %c0_20], %45 {strides = array<i32>} : memref<8x128xbf16, #tpu.memory_space<vmem>>, vector<8x128xbf16>,
      %cst_21 = arith.constant 0xFF800000 : f32
      %47 = vector.broadcast %cst_21 : f32 to vector<8x1xf32>
      %c0_22 = arith.constant 0 : index
      %c0_23 = arith.constant 0 : index
      %48 = vector.load %arg13[%c0_22, %c0_23] : memref<8x1xf32, #tpu.memory_space<vmem>>, vector<8x1xf32>
      tpu.vector_store %arg13[%c0_22, %c0_23], %47 {strides = array<i32>} : memref<8x1xf32, #tpu.memory_space<vmem>>, vector<8x1xf32>,
      %cst_24 = arith.constant 0.000000e+00 : f32
      %49 = vector.broadcast %cst_24 : f32 to vector<8x1xf32>
      %c0_25 = arith.constant 0 : index
      %c0_26 = arith.constant 0 : index
      %50 = vector.load %arg14[%c0_25, %c0_26] : memref<8x1xf32, #tpu.memory_space<vmem>>, vector<8x1xf32>
      tpu.vector_store %arg14[%c0_25, %c0_26], %49 {strides = array<i32>} : memref<8x1xf32, #tpu.memory_space<vmem>>, vector<8x1xf32>,
    } else {
    }
    %c0_i32_2 = arith.constant 0 : i32
    %5 = arith.cmpi eq, %arg0, %c0_i32_2 : i32
    %6 = arith.extui %5 : i1 to i32
    %c0_i32_3 = arith.constant 0 : i32
    %7 = arith.cmpi ne, %6, %c0_i32_3 : i32
    scf.if %7 {
      %c0 = arith.constant 0 : index
      %c0_5 = arith.constant 0 : index
      %11 = vector.load %arg12[%c0, %c0_5] : memref<8x128xbf16, #tpu.memory_space<vmem>>, vector<8x128xbf16>
      %c0_6 = arith.constant 0 : index
      %c0_7 = arith.constant 0 : index
      %12 = vector.load %arg6[%c0_6, %c0_7] : memref<128x128xbf16, #tpu.memory_space<vmem>>, vector<128x128xbf16>
      %cst = arith.constant dense<0.000000e+00> : vector<8x128xf32>
      %13 = tpu.matmul %11, %12, %cst {dimension_numbers = #tpu.dot_dimension_numbers<[1], [0], [0], [1], [0, 0, 1, 1], [], []>} : vector<8x128xbf16>, vector<128x128xbf16>, vector<8x128xf32> -> vector<8x128xf32>
      %c0_8 = arith.constant 0 : index
      %c0_9 = arith.constant 0 : index
      %14 = vector.load %arg7[%c0_8, %c0_9] : memref<1x128xf32, #tpu.memory_space<vmem>>, vector<1x128xf32>
      %15 = vector.broadcast %14 : vector<1x128xf32> to vector<8x128xf32>
      %16 = arith.addf %13, %15 : vector<8x128xf32>
      %17 = arith.index_cast %arg1 : i32 to index
      %c0_10 = arith.constant 0 : index
      %c0_11 = arith.constant 0 : index
      %18 = vector.load %arg11[%17, %c0_10, %c0_11] : memref<1x8x128xf32, #tpu.memory_space<vmem>>, vector<1x8x128xf32>
      %19 = vector.shape_cast %18 : vector<1x8x128xf32> to vector<8x128xf32>
      %20 = vector.shape_cast %16 : vector<8x128xf32> to vector<1x8x128xf32>
      tpu.vector_store %arg11[%17, %c0_10, %c0_11], %20 {strides = array<i32>} : memref<1x8x128xf32, #tpu.memory_space<vmem>>, vector<1x8x128xf32>,
      %c0_12 = arith.constant 0 : index
      %c0_13 = arith.constant 0 : index
      %21 = vector.load %arg13[%c0_12, %c0_13] : memref<8x1xf32, #tpu.memory_space<vmem>>, vector<8x1xf32>
      %cst_14 = arith.constant dense<0xFF800000> : vector<8xf32>
      %22 = vector.multi_reduction <maximumf>, %16, %cst_14 [1] : vector<8x128xf32> to vector<8xf32>
      %23 = vector.shape_cast %22 : vector<8xf32> to vector<8x1xf32>
      %24 = arith.maximumf %21, %23 : vector<8x1xf32>
      %c0_15 = arith.constant 0 : index
      %c0_16 = arith.constant 0 : index
      %25 = vector.load %arg14[%c0_15, %c0_16] : memref<8x1xf32, #tpu.memory_space<vmem>>, vector<8x1xf32>
      %26 = arith.subf %21, %24 : vector<8x1xf32>
      %27 = math.exp %26 : vector<8x1xf32>
      %28 = arith.mulf %25, %27 : vector<8x1xf32>
      %29 = vector.broadcast %24 : vector<8x1xf32> to vector<8x128xf32>
      %30 = arith.subf %16, %29 : vector<8x128xf32>
      %31 = math.exp %30 : vector<8x128xf32>
      %cst_17 = arith.constant dense<0.000000e+00> : vector<8xf32>
      %32 = vector.multi_reduction <add>, %31, %cst_17 [1] : vector<8x128xf32> to vector<8xf32>
      %33 = vector.shape_cast %32 : vector<8xf32> to vector<8x1xf32>
      %34 = arith.addf %28, %33 : vector<8x1xf32>
      %c0_18 = arith.constant 0 : index
      %c0_19 = arith.constant 0 : index
      %35 = vector.load %arg14[%c0_18, %c0_19] : memref<8x1xf32, #tpu.memory_space<vmem>>, vector<8x1xf32>
      tpu.vector_store %arg14[%c0_18, %c0_19], %34 {strides = array<i32>} : memref<8x1xf32, #tpu.memory_space<vmem>>, vector<8x1xf32>,
      %c0_20 = arith.constant 0 : index
      %c0_21 = arith.constant 0 : index
      %36 = vector.load %arg13[%c0_20, %c0_21] : memref<8x1xf32, #tpu.memory_space<vmem>>, vector<8x1xf32>
      tpu.vector_store %arg13[%c0_20, %c0_21], %24 {strides = array<i32>} : memref<8x1xf32, #tpu.memory_space<vmem>>, vector<8x1xf32>,
      %c0_i32_22 = arith.constant 0 : i32
      %37 = arith.cmpi eq, %arg1, %c0_i32_22 : i32
      %38 = arith.extui %37 : i1 to i32
      %c0_i32_23 = arith.constant 0 : i32
      %39 = arith.cmpi ne, %38, %c0_i32_23 : i32
      scf.if %39 {
        %c0_24 = arith.constant 0 : index
        %c0_25 = arith.constant 0 : index
        %40 = vector.load %arg13[%c0_24, %c0_25] : memref<8x1xf32, #tpu.memory_space<vmem>>, vector<8x1xf32>
        %c0_26 = arith.constant 0 : index
        %c0_27 = arith.constant 0 : index
        %41 = vector.load %arg14[%c0_26, %c0_27] : memref<8x1xf32, #tpu.memory_space<vmem>>, vector<8x1xf32>
        %42 = math.log %41 : vector<8x1xf32>
        %43 = arith.addf %40, %42 : vector<8x1xf32>
        %c0_28 = arith.constant 0 : index
        %c0_29 = arith.constant 0 : index
        %44 = vector.load %arg15[%c0_28, %c0_29] : memref<8x1xf32, #tpu.memory_space<vmem>>, vector<8x1xf32>
        tpu.vector_store %arg15[%c0_28, %c0_29], %43 {strides = array<i32>} : memref<8x1xf32, #tpu.memory_space<vmem>>, vector<8x1xf32>,
      } else {
      }
    } else {
    }
    %c1_i32 = arith.constant 1 : i32
    %8 = arith.cmpi eq, %arg0, %c1_i32 : i32
    %9 = arith.extui %8 : i1 to i32
    %c0_i32_4 = arith.constant 0 : i32
    %10 = arith.cmpi ne, %9, %c0_i32_4 : i32
    scf.if %10 {
      %11 = arith.index_cast %arg1 : i32 to index
      %c0 = arith.constant 0 : index
      %c0_5 = arith.constant 0 : index
      %12 = vector.load %arg11[%11, %c0, %c0_5] : memref<1x8x128xf32, #tpu.memory_space<vmem>>, vector<1x8x128xf32>
      %13 = vector.shape_cast %12 : vector<1x8x128xf32> to vector<8x128xf32>
      %c0_6 = arith.constant 0 : index
      %c0_7 = arith.constant 0 : index
      %14 = vector.load %arg15[%c0_6, %c0_7] : memref<8x1xf32, #tpu.memory_space<vmem>>, vector<8x1xf32>
      %15 = vector.broadcast %14 : vector<8x1xf32> to vector<8x128xf32>
      %16 = arith.subf %13, %15 : vector<8x128xf32>
      %c0_8 = arith.constant 0 : index
      %c0_9 = arith.constant 0 : index
      %17 = vector.load %arg8[%c0_8, %c0_9] : memref<8x128xf32, #tpu.memory_space<vmem>>, vector<8x128xf32>
      tpu.vector_store %arg8[%c0_8, %c0_9], %16 {strides = array<i32>} : memref<8x128xf32, #tpu.memory_space<vmem>>, vector<8x128xf32>,
    } else {
    }
    return
  }
  func.func @transform_0(%arg0: i32, %arg1: i32) -> (i32, i32) {
    %c0_i32 = arith.constant 0 : i32
    %c0_i32_0 = arith.constant 0 : i32
    %c0_i32_1 = arith.constant 0 : i32
    return %c0_i32, %c0_i32_0 : i32, i32
  }
  func.func @transform_1(%arg0: i32, %arg1: i32) -> (i32, i32) {
    %c0_i32 = arith.constant 0 : i32
    %c0_i32_0 = arith.constant 0 : i32
    %c0_i32_1 = arith.constant 0 : i32
    return %c0_i32, %c0_i32_0 : i32, i32
  }
  func.func @transform_2(%arg0: i32, %arg1: i32) -> (i32, i32) {
    %c0_i32 = arith.constant 0 : i32
    %c0_i32_0 = arith.constant 0 : i32
    %c0_i32_1 = arith.constant 0 : i32
    return %c0_i32, %c0_i32_0 : i32, i32
  }
  func.func @transform_3(%arg0: i32, %arg1: i32) -> (i32, i32) {
    %c0_i32 = arith.constant 0 : i32
    %c0_i32_0 = arith.constant 0 : i32
    %c0_i32_1 = arith.constant 0 : i32
    return %c0_i32, %c0_i32_0 : i32, i32
  }
  func.func @transform_4(%arg0: i32, %arg1: i32) -> (i32, i32) {
    %c0_i32 = arith.constant 0 : i32
    %0 = arith.subi %c0_i32, %arg1 : i32
    %1 = arith.muli %arg0, %0 : i32
    %2 = arith.addi %arg1, %1 : i32
    %c0_i32_0 = arith.constant 0 : i32
    %c0_i32_1 = arith.constant 0 : i32
    return %c0_i32_0, %2 : i32, i32
  }
  func.func @transform_5(%arg0: i32, %arg1: i32) -> (i32, i32) {
    %c0_i32 = arith.constant 0 : i32
    %0 = arith.subi %c0_i32, %arg1 : i32
    %1 = arith.muli %arg0, %0 : i32
    %2 = arith.addi %arg1, %1 : i32
    %c0_i32_0 = arith.constant 0 : i32
    %c0_i32_1 = arith.constant 0 : i32
    return %c0_i32_0, %2 : i32, i32
  }
  func.func @transform_6(%arg0: i32, %arg1: i32) -> (i32, i32) {
    %0 = arith.muli %arg1, %arg0 : i32
    %c0_i32 = arith.constant 0 : i32
    %c0_i32_0 = arith.constant 0 : i32
    return %c0_i32, %0 : i32, i32
  }
  func.func @transform_7(%arg0: i32, %arg1: i32) -> (i32, i32) {
    %c0_i32 = arith.constant 0 : i32
    %c0_i32_0 = arith.constant 0 : i32
    %c0_i32_1 = arith.constant 0 : i32
    return %c0_i32, %c0_i32_0 : i32, i32
  }
  func.func @transform_8(%arg0: i32, %arg1: i32) -> (i32, i32) {
    %c0_i32 = arith.constant 0 : i32
    %c0_i32_0 = arith.constant 0 : i32
    %c0_i32_1 = arith.constant 0 : i32
    return %c0_i32, %c0_i32_0 : i32, i32
  }
}

</mosaic_0001>

<bundles_post_ra>
// kernel: lstm_decoder_forward.1
= control target key start
LH: loop header
LB: loop body
LE: loop exit
PB: predicated region body
PF: predicated region fallthrough
CT: control target
= control target key end

     0   :  { %14 = vsyncpa [#allocation8], 0  ;;  %s1939_s0 = inlined_call_operand.vmem [shape: bf16[8,256], index: 0, kind: input, shape index: {}]   ;;  %s1940_s1 = inlined_call_operand.vmem [shape: f32[8,128], index: 1, kind: input, shape index: {}]   ;;  %s1941_s2 = inlined_call_operand.hbm [shape: bf16[256,512], index: 2, kind: input, shape index: {}]   ;;  %s1942_s3 = inlined_call_operand.vmem [shape: f32[1,512], index: 3, kind: input, shape index: {}]   ;;  %s1943_s4 = inlined_call_operand.vmem [shape: bf16[128,128], index: 4, kind: input, shape index: {}]   ;;  %s1944_s5 = inlined_call_operand.vmem [shape: f32[1,128], index: 5, kind: input, shape index: {}]   ;;  %s1945_s6 = inlined_call_operand.hbm [shape: f32[8,128], index: 6, kind: output, shape index: {0}]   ;;  %s1946_s7 = inlined_call_operand.hbm [shape: f32[8,128], index: 7, kind: output, shape index: {1}]   ;;  %s1947_s8 = inlined_call_operand.hbm [shape: f32[8,128], index: 8, kind: output, shape index: {2}]  }
   0x1   :  { %15 = vsyncpa [#allocation9], 0 }
   0x2   :  { %17 = vsyncpa [#allocation9 + $0x1], 0 }
   0x3   :  { %18 = vsyncpa [#allocation12], 0  ;;  %s1759_s27 = smov 0   ;;  %s1761_s28 = smov 0  }
   0x4   :  { %s1763_s29 = smov 0  }
   0x5 LB: > { %s1233_s30 = sadd.s32 4294967295, %s1700_s29   ;;  %s1234_s9 = sadd.s32 4294967294, %s1700_s29   ;;  %s1700_s29 = sphi %s1763_s29, %s24_s29   ;;  %s1696_s28 = sphi %s1761_s28, %s1958_s28   ;;  %s1692_s27 = sphi %s1759_s27, %s1957_s27  }
   0x6   : > { %s36_s10 = sadd.s32 1, %s1696_s28  ;;  %p1235_p0 = scmp.ge.s32.totalorder %s1700_s29, 1 }
   0x7   : > { %p38_p1 = scmp.ge.s32.totalorder %s36_s10, 2  ;;  %p259_p2 = scmp.lt.s32.totalorder %s1700_s29, 3 }
   0x8   : > { %p1781_p3 = scmp.eq.s32.totalorder %s1233_s30, 0  ;;  %s1702_s13 = smov [#allocation7]  }
   0x9   : > { %s1960_s10 = smov (%p38_p1, %s36_s10), 0  ;;  %p1787_p4 = pnand %p1235_p0, %p259_p2 }
   0xa   : > { %s1951_s11 = scalar_select %p1781_p3, 1, 0 }
   0xb   : > { %s1952_s12 = scalar_select %p1787_p4, 1, 0 }
   0xc   : > { %s277_s14 = sshll.u32 %s1702_s13, 4  ;;  %p1377_p5 = pneg %p1787_p4  ;;  %s278_s14 = int_to_ptr.vmem [resolvable:$true] %s277_s14 }
   0xd   : > { %s1560_s18 = scalar_lea.hbm %s1941_s2, 8192 }
   0xe   : > { %p1795_p6 = pnand %p1781_p3, %p1377_p5  ;;  %p1561_p7 = scmp.ne.s32.totalorder %s1941_s2, %s1560_s18 }
   0xf   : > { %p1567_p11 = scmp.lt.u32.totalorder %s1560_s18, %s1941_s2 }
  0x10   : > { %p1562_p8 = pneg %p1795_p6 }
  0x12   : > { %p1563_p9 = pnand %p1562_p8, %p1561_p7 }
  0x14   : > { %p1564_p10 = pneg %p1563_p9 }
  0x16   : > { %p1569_p12 = pnand %p1567_p11, %p1564_p10 }
  0x18   : > { %1572 = shalt.err (!%p1569_p12)
}
  0x19   : > { %s1573_s23 = scalar_lea.vmem %s278_s14, 8192  ;;  %p1581_p2 = scmp.lt.s32.totalorder %s278_s14, %s278_s14 }
  0x1a   : > { %p1574_p13 = scmp.ne.s32.totalorder %s278_s14, %s1573_s23  ;;  %p1582_p5 = scmp.lt.s32.totalorder %s1573_s23, %s1573_s23 }
  0x1c   : > { %p1576_p0 = pnand %p1574_p13, %p1562_p8  ;;  %p1583_p3 = por %p1582_p5, %p1581_p2 }
  0x1e   : > { %p1577_p1 = pneg %p1576_p0 }
  0x20   : > { %p1584_p4 = pnand %p1583_p3, %p1577_p1 }
  0x22   : > { %1587 = shalt.err (!%p1584_p4)
}
  0x23   : > { %s1703_s24 = smov 256   ;;  %s1704_s25 = smov 16  }
  0x24   : > { %1380 = dma.hbm_to_vmem [thread:$0]  (!%p1795_p6), %s1941_s2, 8192, %s278_s14, [#allocation8], %s1703_s24, %s1703_s24, %s1704_s25  }
  0x25   : > { %p1954_p7 = scmp.ne.s32.totalorder %s1952_s12, 0 }
  0x26   : > { %p1955_p9 = scmp.ne.s32.totalorder (!%p1954_p7), %s1951_s11, 0 }
  0x27   : > { %321 = sbr.rel (%p1954_p7) target bundleno = 1284 (0x504), region = 44 }
  0x2e   : > { %1679 = dma.done.wait (%p1955_p9), [#allocation8], 8192  }
  0x2f   : > { %1681 = vsyncadd (%p1955_p9), [#allocation8], 4294959104  ;;  %p384_p3 = scmp.eq.s32.totalorder %s1692_s27, 0 }
  0x30   : > { %v1430_v0 = vld [vmem:[#allocation7 + $0x4] ss:$16 sps:$4 sm:$0xff] (%p384_p3)   ;;  %v1432_v1 = vld [vmem:[#allocation7] ss:$16 sps:$4 sm:$0xff] (%p384_p3)   ;;  %v1441_v5 = vld [vmem:[#allocation7 + $0xc] ss:$16 sps:$4 sm:$0xff] (%p384_p3)  }
  0x31   : > { %389 = sbr.rel (!%p384_p3) target bundleno = 374 (0x176), region = 52  ;;  %805 = vmatprep.subr.bf16.mxu0 (%p384_p3), %v1430_v0  ;;  %v1433_v2 = vld [vmem:[#allocation7 + $0x24] ss:$16 sps:$4 sm:$0xff] (%p384_p3)   ;;  %v1435_v3 = vld [vmem:[#allocation7 + $0x20] ss:$16 sps:$4 sm:$0xff] (%p384_p3)   ;;  %846 = vmatprep.subr.bf16.mxu1 (%p384_p3), %v1441_v5  ;;  %vm915_vm0 = vcmask (%p384_p3), 7168   ;;  %v458_v5 = vlaneseq (%p384_p3) }
  0x32   : > { %806 = vmatpush1.bf16.msra.mxu0 (%p384_p3), %v1432_v1  ;;  %v1436_v4 = vld [vmem:[#allocation7 + $0x44] ss:$16 sps:$4 sm:$0xff] (%p384_p3)   ;;  %v1444_v6 = vld [vmem:[#allocation7 + $0x8] ss:$16 sps:$4 sm:$0xff] (%p384_p3)   ;;  %v1438_v7 = vld [vmem:[#allocation7 + $0x40] ss:$16 sps:$4 sm:$0xff] (%p384_p3)  }
  0x33   : > { %807 = vmatprep.subr.bf16.mxu0 (%p384_p3), %v1433_v2  ;;  %v1439_v8 = vld [vmem:[#allocation7 + $0x64] ss:$16 sps:$4 sm:$0xff] (%p384_p3)   ;;  %847 = vmatpush1.bf16.msra.mxu1 (%p384_p3), %v1444_v6  ;;  %v1447_v9 = vld [vmem:[#allocation7 + $0x2c] ss:$16 sps:$4 sm:$0xff] (%p384_p3)   ;;  %v1450_v10 = vld [vmem:[#allocation7 + $0x28] ss:$16 sps:$4 sm:$0xff] (%p384_p3)  }
  0x34   : > { %848 = vmatprep.subr.bf16.mxu1 (%p384_p3), %v1447_v9  ;;  %v1443_v11 = vld [vmem:[#allocation7 + $0x60] ss:$16 sps:$4 sm:$0xff] (%p384_p3)   ;;  %v1445_v12 = vld [vmem:[#allocation7 + $0x84] ss:$16 sps:$4 sm:$0xff] (%p384_p3)   ;;  %v1453_v13 = vld [vmem:[#allocation7 + $0x4c] ss:$16 sps:$4 sm:$0xff] (%p384_p3)  }
  0x35   : > { %v1456_v14 = vld [vmem:[#allocation7 + $0x48] ss:$16 sps:$4 sm:$0xff] (%p384_p3)   ;;  %v1459_v15 = vld [vmem:[#allocation7 + $0x6c] ss:$16 sps:$4 sm:$0xff] (%p384_p3)   ;;  %v1449_v16 = vld [vmem:[#allocation7 + $0x80] ss:$16 sps:$4 sm:$0xff] (%p384_p3)  }
  0x36   : > { %808 = vmatpush1.bf16.msra.mxu0 (%p384_p3), %v1435_v3  ;;  %v1451_v17 = vld [vmem:[#allocation7 + $0xa4] ss:$16 sps:$4 sm:$0xff] (%p384_p3)   ;;  %v1462_v18 = vld [vmem:[#allocation7 + $0x68] ss:$16 sps:$4 sm:$0xff] (%p384_p3)   ;;  %v1465_v19 = vld [vmem:[#allocation7 + $0x8c] ss:$16 sps:$4 sm:$0xff] (%p384_p3)  }
  0x37   : > { %809 = vmatprep.subr.bf16.mxu0 (%p384_p3), %v1436_v4  ;;  %849 = vmatpush1.bf16.msra.mxu1 (%p384_p3), %v1450_v10  ;;  %v1455_v20 = vld [vmem:[#allocation7 + $0xa0] ss:$16 sps:$4 sm:$0xff] (%p384_p3)   ;;  %v1457_v21 = vld [vmem:[#allocation7 + $0xc4] ss:$16 sps:$4 sm:$0xff] (%p384_p3)   ;;  %v1468_v22 = vld [vmem:[#allocation7 + $0x88] ss:$16 sps:$4 sm:$0xff] (%p384_p3)  }
  0x38   : > { %850 = vmatprep.subr.bf16.mxu1 %v1453_v13  ;;  %v1471_v23 = vld [vmem:[#allocation7 + $0xac] ss:$16 sps:$4 sm:$0xff]   ;;  %v1461_v24 = vld [vmem:[#allocation7 + $0xc0] ss:$16 sps:$4 sm:$0xff]   ;;  %v1463_v25 = vld [vmem:[#allocation7 + $0xe4] ss:$16 sps:$4 sm:$0xff]  }
  0x39   : > { %v1474_v26 = vld [vmem:[#allocation7 + $0xa8] ss:$16 sps:$4 sm:$0xff]   ;;  %v1477_v27 = vld [vmem:[#allocation7 + $0xcc] ss:$16 sps:$4 sm:$0xff]   ;;  %v1467_v28 = vld [vmem:[#allocation7 + $0xe0] ss:$16 sps:$4 sm:$0xff]  }
  0x3a   : > { %810 = vmatpush1.bf16.msra.mxu0 %v1438_v7  ;;  %v1469_v29 = vld [vmem:[#allocation7 + $0x104] ss:$16 sps:$4 sm:$0xff]   ;;  %v1480_v30 = vld [vmem:[#allocation7 + $0xc8] ss:$16 sps:$4 sm:$0xff]   ;;  %v1483_v31 = vld [vmem:[#allocation7 + $0xec] ss:$16 sps:$4 sm:$0xff]  }
  0x3b   : > { %811 = vmatprep.subr.bf16.mxu0 %v1439_v8  ;;  %851 = vmatpush1.bf16.msra.mxu1 %v1456_v14  ;;  %v1473_v32 = vld [vmem:[#allocation7 + $0x100] ss:$16 sps:$4 sm:$0xff]   ;;  %v1475_v33 = vld [vmem:[#allocation7 + $0x124] ss:$16 sps:$4 sm:$0xff]   ;;  %v1486_v34 = vld [vmem:[#allocation7 + $0xe8] ss:$16 sps:$4 sm:$0xff]  }
  0x3c   : > { %852 = vmatprep.subr.bf16.mxu1 %v1459_v15  ;;  %v1489_v35 = vld [vmem:[#allocation7 + $0x10c] ss:$16 sps:$4 sm:$0xff]   ;;  %v1479_v36 = vld [vmem:[#allocation7 + $0x120] ss:$16 sps:$4 sm:$0xff]   ;;  %v1481_v37 = vld [vmem:[#allocation7 + $0x144] ss:$16 sps:$4 sm:$0xff]  }
  0x3d   : > { %v1492_v38 = vld [vmem:[#allocation7 + $0x108] ss:$16 sps:$4 sm:$0xff]   ;;  %v1495_v39 = vld [vmem:[#allocation7 + $0x12c] ss:$16 sps:$4 sm:$0xff]   ;;  %v1485_v40 = vld [vmem:[#allocation7 + $0x140] ss:$16 sps:$4 sm:$0xff]  }
  0x3e   : > { %812 = vmatpush1.bf16.msra.mxu0 %v1443_v11  ;;  %v390_v41 = vld [vmem:[%s1939_s0] sm:$0xff]  ;;  %v1487_v42 = vld [vmem:[#allocation7 + $0x164] ss:$16 sps:$4 sm:$0xff]   ;;  %v1498_v44 = vld [vmem:[#allocation7 + $0x128] ss:$16 sps:$4 sm:$0xff]   ;;  %v1705_v3 = vmov -inf  }
  0x3f   : > { %813 = vmatprep.subr.bf16.mxu0 %v1445_v12  ;;  %853 = vmatpush1.bf16.msra.mxu1 %v1462_v18  ;;  %v1244_v43 = vcombine.high %v390_v41, %v390_v41  ;;  %v1501_v45 = vld [vmem:[#allocation7 + $0x14c] ss:$16 sps:$4 sm:$0xff]   ;;  %v1491_v46 = vld [vmem:[#allocation7 + $0x160] ss:$16 sps:$4 sm:$0xff]   ;;  %v1493_v47 = vld [vmem:[#allocation7 + $0x184] ss:$16 sps:$4 sm:$0xff]   ;;  %v1243_v1 = vcombine.low %v390_v41, %v390_v41 }
  0x40   : > { %854 = vmatprep.subr.bf16.mxu1 %v1465_v19  ;;  %v1504_v48 = vld [vmem:[#allocation7 + $0x148] ss:$16 sps:$4 sm:$0xff]   ;;  %v1507_v49 = vld [vmem:[#allocation7 + $0x16c] ss:$16 sps:$4 sm:$0xff]   ;;  %v1497_v50 = vld [vmem:[#allocation7 + $0x180] ss:$16 sps:$4 sm:$0xff]  }
  0x41   : > { %837 = vmatprep.mubr.bf16.mxu0 %v1244_v43  ;;  %878 = vmatprep.mubr.bf16.mxu1 %v1244_v43  ;;  %v1499_v51 = vld [vmem:[#allocation7 + $0x1a4] ss:$16 sps:$4 sm:$0xff]   ;;  %v1510_v52 = vld [vmem:[#allocation7 + $0x168] ss:$16 sps:$4 sm:$0xff]   ;;  %v1513_v53 = vld [vmem:[#allocation7 + $0x18c] ss:$16 sps:$4 sm:$0xff]  }
  0x42   : > { %814 = vmatpush1.bf16.msra.mxu0 %v1449_v16  ;;  %v1503_v54 = vld [vmem:[#allocation7 + $0x1a0] ss:$16 sps:$4 sm:$0xff]   ;;  %v1505_v55 = vld [vmem:[#allocation7 + $0x1c4] ss:$16 sps:$4 sm:$0xff]   ;;  %v1516_v56 = vld [vmem:[#allocation7 + $0x188] ss:$16 sps:$4 sm:$0xff]  }
  0x43   : > { %815 = vmatprep.subr.bf16.mxu0 %v1451_v17  ;;  %855 = vmatpush1.bf16.msra.mxu1 %v1468_v22  ;;  %v1519_v57 = vld [vmem:[#allocation7 + $0x1ac] ss:$16 sps:$4 sm:$0xff]   ;;  %v1509_v58 = vld [vmem:[#allocation7 + $0x1c0] ss:$16 sps:$4 sm:$0xff]   ;;  %v1511_v59 = vld [vmem:[#allocation7 + $0x1e4] ss:$16 sps:$4 sm:$0xff]  }
  0x44   : > { %856 = vmatprep.subr.bf16.mxu1 %v1471_v23  ;;  %v1521_v60 = vld [vmem:[#allocation7 + $0x1a8] ss:$16 sps:$4 sm:$0xff]   ;;  %v1522_v61 = vld [vmem:[#allocation7 + $0x1cc] ss:$16 sps:$4 sm:$0xff]   ;;  %v1515_v62 = vld [vmem:[#allocation7 + $0x1e0] ss:$16 sps:$4 sm:$0xff]  }
  0x45   : > { %v1524_v63 = vld [vmem:[#allocation7 + $0x1c8] ss:$16 sps:$4 sm:$0xff]   ;;  %v1525_v0 = vld [vmem:[#allocation7 + $0x1ec] ss:$16 sps:$4 sm:$0xff]   ;;  %916 = vst.msk [vmem:[#allocation4] sm:$0xff] %vm915_vm0, %v1705_v3  ;;  %v1706_v4 = vmov 0.0  }
  0x46   : > { %816 = vmatpush1.bf16.msra.mxu0 %v1455_v20  ;;  %v1527_v2 = vld [vmem:[#allocation7 + $0x1e8] ss:$16 sps:$4 sm:$0xff]   ;;  %917 = vst.msk [vmem:[#allocation5] sm:$0xff] %vm915_vm0, %v1706_v4  ;;  %v459_v6 = vshrl.u32 %v458_v5, 7  ;;  %v456_v8 = vld [vmem:[%s1942_s3] sm:$0xf] }
  0x47   : > { %817 = vmatprep.subr.bf16.mxu0 %v1457_v21  ;;  %857 = vmatpush1.bf16.msra.mxu1 %v1474_v26 }
  0x48   : > { %858 = vmatprep.subr.bf16.mxu1 %v1477_v27  ;;  %v460_v7 = vsub.s32 0, %v459_v6  ;;  %v464_v9 = vsub.s32 1, %v459_v6  ;;  %v472_v12 = vsub.s32 3, %v459_v6  ;;  %v468_v22 = vsub.s32 2, %v459_v6 }
  0x4a   : > { %818 = vmatpush1.bf16.msra.mxu0 %v1461_v24  ;;  %v461_v10 = vrot.slane %v456_v8, %v460_v7  ;;  %v465_v11 = vrot.slane %v456_v8, %v464_v9  ;;  %v473_v20 = vrot.slane %v456_v8, %v472_v12  ;;  %v469_v27 = vrot.slane %v456_v8, %v468_v22 }
  0x4b   : > { %819 = vmatprep.subr.bf16.mxu0 %v1463_v25  ;;  %859 = vmatpush1.bf16.msra.mxu1 %v1480_v30 }
  0x4c   : > { %860 = vmatprep.subr.bf16.mxu1 %v1483_v31 }
  0x4e   : > { %820 = vmatpush1.bf16.msra.mxu0 %v1467_v28 }
  0x4f   : > { %821 = vmatprep.subr.bf16.mxu0 %v1469_v29  ;;  %861 = vmatpush1.bf16.msra.mxu1 %v1486_v34 }
  0x50   : > { %862 = vmatprep.subr.bf16.mxu1 %v1489_v35 }
  0x52   : > { %822 = vmatpush1.bf16.msra.mxu0 %v1473_v32 }
  0x53   : > { %823 = vmatprep.subr.bf16.mxu0 %v1475_v33  ;;  %863 = vmatpush1.bf16.msra.mxu1 %v1492_v38 }
  0x54   : > { %864 = vmatprep.subr.bf16.mxu1 %v1495_v39 }
  0x56   : > { %824 = vmatpush1.bf16.msra.mxu0 %v1479_v36 }
  0x57   : > { %825 = vmatprep.subr.bf16.mxu0 %v1481_v37  ;;  %865 = vmatpush1.bf16.msra.mxu1 %v1498_v44  ;;  %v391_v37 = vld [vmem:[%s1940_s1] sm:$0xff] }
  0x58   : > { %866 = vmatprep.subr.bf16.mxu1 %v1501_v45 }
  0x5a   : > { %826 = vmatpush1.bf16.msra.mxu0 %v1485_v40 }
  0x5b   : > { %827 = vmatprep.subr.bf16.mxu0 %v1487_v42  ;;  %867 = vmatpush1.bf16.msra.mxu1 %v1504_v48 }
  0x5c   : > { %868 = vmatprep.subr.bf16.mxu1 %v1507_v49 }
  0x5e   : > { %828 = vmatpush1.bf16.msra.mxu0 %v1491_v46 }
  0x5f   : > { %829 = vmatprep.subr.bf16.mxu0 %v1493_v47  ;;  %869 = vmatpush1.bf16.msra.mxu1 %v1510_v52 }
  0x60   : > { %870 = vmatprep.subr.bf16.mxu1 %v1513_v53 }
  0x62   : > { %830 = vmatpush1.bf16.msra.mxu0 %v1497_v50 }
  0x63   : > { %831 = vmatprep.subr.bf16.mxu0 %v1499_v51  ;;  %871 = vmatpush1.bf16.msra.mxu1 %v1516_v56 }
  0x64   : > { %872 = vmatprep.subr.bf16.mxu1 %v1519_v57 }
  0x66   : > { %832 = vmatpush1.bf16.msra.mxu0 %v1503_v54 }
  0x67   : > { %833 = vmatprep.subr.bf16.mxu0 %v1505_v55  ;;  %873 = vmatpush1.bf16.msra.mxu1 %v1521_v60 }
  0x68   : > { %874 = vmatprep.subr.bf16.mxu1 %v1522_v61 }
  0x6a   : > { %834 = vmatpush1.bf16.msra.mxu0 %v1509_v58 }
  0x6b   : > { %835 = vmatprep.subr.bf16.mxu0 %v1511_v59  ;;  %875 = vmatpush1.bf16.msra.mxu1 %v1524_v63 }
  0x6c   : > { %876 = vmatprep.subr.bf16.mxu1 %v1525_v0 }
  0x6e   : > { %836 = vmatpush1.bf16.msra.mxu0 %v1515_v62 }
  0x6f   : > { %877 = vmatpush1.bf16.msra.mxu1 %v1527_v2 }
  0x71   : > { %838 = vmatmul.mubr.bf16.vlgmr.msra.gmra.mrb[0].mxu0 %v1243_v1 }
  0x72   : > { %879 = vmatmul.mubr.bf16.vlgmr.msra.gmra.mrb[0].mxu1 %v1243_v1 }
 0x144   : > { %v839_v13 = vpop.f32.mrb[0].mxu0 }
 0x145   : > { %v840_v14 = vadd.f32 %v839_v13, %v461_v10  ;;  %v841_v15 = vpop.f32.mrb[1].mxu0  ;;  %v880_v23 = vpop.f32.mrb[0].mxu1 }
 0x146   : > { %v842_v16 = vadd.f32 %v841_v15, %v465_v11  ;;  %v843_v17 = vpop.f32.mrb[2].mxu0  ;;  %v882_v24 = vpop.f32.mrb[1].mxu1  ;;  %v881_v30 = vadd.f32 %v880_v23, %v469_v27 }
 0x147   : > { %v1309_v18 = vmul.f32 -1.442695, %v840_v14  ;;  %v844_v19 = vpop.f32.mrb[3].mxu0  ;;  %v883_v25 = vadd.f32 %v882_v24, %v473_v20  ;;  %v884_v26 = vpop.f32.mrb[2].mxu1 }
 0x148   : > { %v1310_v21 = vmul.f32 -1.442695, %v842_v16  ;;  %v885_v28 = vpop.f32.mrb[3].mxu1 }
 0x149   : > { %1528 = vpow2.f32 %v1309_v18  ;;  %v1311_v29 = vmul.f32 -1.442695, %v883_v25 }
 0x14a   : > { %1530 = vpow2.f32 %v1310_v21 }
 0x14b   : > { %1532 = vpow2.f32 %v1311_v29 }
 0x14c   : > { %1534 = vtanh.f32 %v881_v30 }
 0x153   : > { %v1529_v31 = vpop.eup %1528 }
 0x154   : > { %v1531_v32 = vpop.eup %1530  ;;  %v890_v33 = vadd.f32 1.0, %v1529_v31 }
 0x155   : > { %v896_v34 = vadd.f32 1.0, %v1531_v32  ;;  %v1533_v35 = vpop.eup %1532 }
 0x156   : > { %1536 = vrcp.f32 %v890_v33  ;;  %v1535_v36 = vpop.eup %1534  ;;  %v903_v39 = vadd.f32 1.0, %v1533_v35 }
 0x157   : > { %1538 = vrcp.f32 %v896_v34 }
 0x158   : > { %1540 = vrcp.f32 %v903_v39 }
 0x160   : > { %v1537_v38 = vpop.eup %1536 }
 0x161   : > { %v1539_v40 = vpop.eup %1538  ;;  %v907_v41 = vmul.f32 %v1537_v38, %v1535_v36 }
 0x162   : > { %v906_v42 = vmul.f32 %v1539_v40, %v391_v37  ;;  %v1541_v44 = vpop.eup %1540 }
 0x164   : > { %v908_v43 = vadd.f32 %v907_v41, %v906_v42 }
 0x166   : > { %1542 = vtanh.f32 %v908_v43  ;;  %912 = vst [vmem:[#allocation13] sm:$0xff] %v908_v43 }
 0x170   : > { %v1543_v45 = vpop.eup %1542 }
 0x171   : > { %v910_v46 = vmul.f32 %v1543_v45, %v1541_v44 }
 0x173   : > { %911 = vst [vmem:[#allocation11] sm:$0xff] %v910_v46  ;;  %v913_v47 = vpack.c.bf16 %v910_v46, %v910_v46 }
 0x175   : > { %914 = vst [vmem:[#allocation3] sm:$0xf] %v913_v47 }
 0x176 PF: > { %p1312_p4 = scmp.ne.s32.totalorder %s1692_s27, 0 }
 0x177   : > { %v1545_v48 = vld [vmem:[%s1943_s4] sm:$0xff] (!%p1312_p4)   ;;  %v1707_v49 = vmov (!%p1312_p4), 0.0   ;;  %v1546_v50 = vld [vmem:[%s1943_s4 + $0x8] sm:$0xff] (!%p1312_p4)   ;;  %vm1708_vm1 = vmmov (!%p1312_p4), 0   ;;  %v1547_v51 = vld [vmem:[%s1943_s4 + $0x10] sm:$0xff] (!%p1312_p4)   ;;  %v1709_v0 = vmov (!%p1312_p4), 0  }
 0x178   : > { %920 = sbr.rel (%p1312_p4) target bundleno = 1077 (0x435), region = 56  ;;  %1341 = vmatprep.subr.bf16.mxu0 (!%p1312_p4), %v1707_v49  ;;  %1357 = vmatprep.mubr.msk.bf16.mxu0 (!%p1312_p4), %vm1708_vm1, %v1707_v49  ;;  %v1548_v52 = vld [vmem:[%s1943_s4 + $0x18] sm:$0xff] (!%p1312_p4)   ;;  %v1549_v53 = vld [vmem:[%s1943_s4 + $0x20] sm:$0xff] (!%p1312_p4)   ;;  %v1550_v54 = vld [vmem:[%s1943_s4 + $0x28] sm:$0xff] (!%p1312_p4)   ;;  %vm1056_vm2 = vcmask (!%p1312_p4), 7168  }
 0x179   : > { %1342 = vmatpush3.bf16.msra.mxu0 (!%p1312_p4), %v1545_v48  ;;  %v1551_v55 = vld [vmem:[%s1943_s4 + $0x30] sm:$0xff] (!%p1312_p4)   ;;  %v1552_v56 = vld [vmem:[%s1943_s4 + $0x38] sm:$0xff] (!%p1312_p4)   ;;  %v1313_v58 = vld [vmem:[%s1944_s5] ss:$0 sm:$0xff] (!%p1312_p4)  ;;  %1544 = vset.pattern.permute.xlu0 (!%p1312_p4), %v1709_v0 }
 0x17a   : > { %1343 = vmatprep.subr.bf16.mxu0 (!%p1312_p4), %v1707_v49  ;;  %v1036_v1 = vld [vmem:[#allocation4] sm:$0xff] (!%p1312_p4)  ;;  %v1040_v11 = vld [vmem:[#allocation5] sm:$0xff] (!%p1312_p4) }
 0x17c   : > { %v921_v57 = vld [vmem:[#allocation3] sm:$0xf] (!%p1312_p4) }
 0x17d   : > { %1344 = vmatpush3.bf16.msra.mxu0 (!%p1312_p4), %v1546_v50 }
 0x17e   : > { %1345 = vmatprep.subr.bf16.mxu0 (!%p1312_p4), %v1707_v49 }
 0x181   : > { %1346 = vmatpush3.bf16.msra.mxu0 %v1547_v51 }
 0x182   : > { %1347 = vmatprep.subr.bf16.mxu0 %v1707_v49 }
 0x185   : > { %1348 = vmatpush3.bf16.msra.mxu0 %v1548_v52 }
 0x186   : > { %1349 = vmatprep.subr.bf16.mxu0 %v1707_v49 }
 0x189   : > { %1350 = vmatpush3.bf16.msra.mxu0 %v1549_v53 }
 0x18a   : > { %1351 = vmatprep.subr.bf16.mxu0 %v1707_v49 }
 0x18d   : > { %1352 = vmatpush3.bf16.msra.mxu0 %v1550_v54 }
 0x18e   : > { %1353 = vmatprep.subr.bf16.mxu0 %v1707_v49 }
 0x191   : > { %1354 = vmatpush3.bf16.msra.mxu0 %v1551_v55 }
 0x192   : > { %1355 = vmatprep.subr.bf16.mxu0 %v1707_v49 }
 0x195   : > { %1356 = vmatpush3.bf16.msra.mxu0 %v1552_v56 }
 0x198   : > { %1358 = vmatmul.mubr.bf16.vlgmr.msra.gmra.mrb[0].mxu0 %v921_v57 }
 0x26b   : > { %v1027_v59 = vpop.f32.mrb[0].mxu0 }
 0x26c   : > { %v1028_v60 = vadd.f32 %v1313_v58, %v1027_v59  ;;  %v1359_v61 = vpop.f32.mrb[1].mxu0 }
 0x26d   : > { %v1030_v62 = vpop.f32.mrb[2].mxu0 }
 0x26e   : > { %1035 = vst [vmem:[#allocation2] sm:$0xff] %v1028_v60  ;;  %1037 = vmax.xlane.f32.xlu0 %v1028_v60  ;;  %v1360_v63 = vpop.f32.mrb[3].mxu0 }
 0x2fb   : > { %v1038_v2 = vpop.xlane.xlu0 %1037 }
 0x2fc   : > { %v1039_v3 = vmax.f32 %v1036_v1, %v1038_v2 }
 0x2fe   : > { %v1041_v4 = vsub.f32 %v1036_v1, %v1039_v3  ;;  %1058 = vst.msk [vmem:[#allocation4] sm:$0xff] %vm1056_vm2, %v1039_v3  ;;  %1047 = vperm.xlu0 %1544, %v1039_v3  }
 0x300   : > { %v1042_v9 = vmul.f32 1.442695, %v1041_v4 }
 0x305   : > { %v1062_v18 = vld [vmem:[#allocation4] sm:$0xff] }
 0x37d   : > { %v1048_v5 = vpop.permute.xlu0 %1047 }
 0x37e   : > { %v1050_v6 = vsub.f32 %v1028_v60, %v1048_v5 }
 0x380   : > { %v1051_v7 = vmul.f32 1.442695, %v1050_v6 }
 0x382   : > { %1553 = vpow2.f32 %v1051_v7 }
 0x383   : > { %1555 = vpow2.f32 %v1042_v9 }
 0x38c   : > { %v1554_v8 = vpop.eup %1553 }
 0x38d   : > { %1053 = vadd.xlane.f32.xlu1 %v1554_v8  ;;  %v1556_v10 = vpop.eup %1555 }
 0x38e   : > { %v1044_v12 = vmul.f32 %v1556_v10, %v1040_v11 }
 0x41a   : > { %v1054_v13 = vpop.xlane.xlu1 %1053 }
 0x41b   : > { %v1055_v14 = vadd.f32 %v1054_v13, %v1044_v12 }
 0x41d   : > { %1057 = vst.msk [vmem:[#allocation5] sm:$0xff] %vm1056_vm2, %v1055_v14 }
 0x424   : > { %v1063_v15 = vld [vmem:[#allocation5] sm:$0xff] }
 0x425   : > { %1557 = vlog2.f32 %v1063_v15 }
 0x42f   : > { %v1558_v16 = vpop.eup %1557 }
 0x430   : > { %v1065_v17 = vmul.f32 0.6931472, %v1558_v16 }
 0x432   : > { %v1066_v19 = vadd.f32 %v1065_v17, %v1062_v18 }
 0x434   : > { %1067 = vst.msk [vmem:[#allocation6] sm:$0xff] %vm1056_vm2, %v1066_v19 }
 0x435 PF: > { %p1322_p6 = scmp.ne.s32.totalorder %s1692_s27, 1 }
 0x436   : > { %v1710_v21 = vmov (!%p1322_p6), 0   ;;  %v1074_v22 = vld [vmem:[#allocation2] sm:$0xff] (!%p1322_p6) }
 0x437   : > { %1071 = sbr.rel (%p1322_p6) target bundleno = 1215 (0x4bf), region = 64  ;;  %1559 = vset.pattern.permute.xlu0 (!%p1322_p6), %v1710_v21 }
 0x43b   : > { %v1075_v20 = vld [vmem:[#allocation6] sm:$0xff] (!%p1322_p6) }
 0x43c   : > { %1078 = vperm.xlu0 (!%p1322_p6), %1559, %v1075_v20  }
 0x4bb   : > { %v1079_v23 = vpop.permute.xlu0 %1078 }
 0x4bc   : > { %v1081_v24 = vsub.f32 %v1074_v22, %v1079_v23 }
 0x4be   : > { %1082 = vst [vmem:[#allocation10] sm:$0xff] %v1081_v24 }
 0x4bf PF: > { %p1865_p8 = scmp.eq.s32.totalorder %s1233_s30, 1  ;;  %s1711_s21 = smov [#allocation11]  }
 0x4c0   : > { %s1109_s22 = sshll.u32 %s1711_s21, 4  ;;  %s1110_s22 = int_to_ptr.vmem [resolvable:$true] %s1109_s22 }
 0x4c1   : > { %s1588_s27 = scalar_lea.vmem %s1110_s22, 128  ;;  %p1595_p13 = scmp.lt.s32.totalorder %s1110_s22, %s1110_s22 }
 0x4c2   : > { %p1589_p10 = scmp.ne.s32.totalorder %s1110_s22, %s1588_s27  ;;  %p1596_p0 = scmp.lt.s32.totalorder %s1588_s27, %s1588_s27 }
 0x4c4   : > { %p1590_p11 = pnand %p1589_p10, %p1865_p8  ;;  %p1597_p1 = por %p1596_p0, %p1595_p13 }
 0x4c6   : > { %p1591_p12 = pneg %p1590_p11 }
 0x4c8   : > { %p1598_p2 = pnand %p1597_p1, %p1591_p12 }
 0x4ca   : > { %1601 = shalt.err (!%p1598_p2)
}
 0x4cb   : > { %s1602_s30 = scalar_lea.hbm %s1946_s7, 128 }
 0x4cc   : > { %p1603_p5 = scmp.ne.s32.totalorder %s1946_s7, %s1602_s30  ;;  %p1608_p3 = scmp.lt.u32.totalorder %s1602_s30, %s1946_s7 }
 0x4ce   : > { %p1604_p7 = pnand %p1603_p5, %p1865_p8 }
 0x4d0   : > { %p1605_p9 = pneg %p1604_p7 }
 0x4d2   : > { %p1610_p4 = pnand %p1608_p3, %p1605_p9 }
 0x4d4   : > { %1613 = shalt.err (!%p1610_p4)
}
 0x4d5   : > { %1368 = dma.vmem_to_hbm [thread:$0]  (%p1865_p8), %s1110_s22, 128, %s1946_s7, [#allocation12]  }
 0x4d6   : > { %s1712_s15 = smov [#allocation10]   ;;  %s1713_s17 = smov [#allocation13]  }
 0x4d7   : > { %s1098_s16 = sshll.u32 %s1712_s15, 4  ;;  %s1120_s18 = sshll.u32 %s1713_s17, 4  ;;  %s1099_s16 = int_to_ptr.vmem [resolvable:$true] %s1098_s16  ;;  %s1121_s18 = int_to_ptr.vmem [resolvable:$true] %s1120_s18 }
 0x4d8   : > { %s1614_s19 = scalar_lea.vmem %s1099_s16, 128  ;;  %s1620_s21 = scalar_lea.vmem %s1099_s16, 256 }
 0x4d9   : > { %p1615_p6 = scmp.ne.s32.totalorder %s1099_s16, %s1614_s19  ;;  %p1621_p12 = scmp.lt.s32.totalorder %s1099_s16, %s1099_s16 }
 0x4da   : > { %p1622_p13 = scmp.lt.s32.totalorder %s1620_s21, %s1614_s19 }
 0x4db   : > { %p1616_p10 = pnand %p1615_p6, %p1865_p8 }
 0x4dc   : > { %p1623_p0 = por %p1622_p13, %p1621_p12 }
 0x4dd   : > { %p1617_p11 = pneg %p1616_p10 }
 0x4df   : > { %p1624_p1 = pnand %p1623_p0, %p1617_p11 }
 0x4e1   : > { %1627 = shalt.err (!%p1624_p1)
}
 0x4e2   : > { %s1628_s22 = scalar_lea.hbm %s1945_s6, 128 }
 0x4e3   : > { %p1629_p2 = scmp.ne.s32.totalorder %s1945_s6, %s1628_s22  ;;  %p1634_p9 = scmp.lt.u32.totalorder %s1628_s22, %s1945_s6 }
 0x4e5   : > { %p1630_p5 = pnand %p1629_p2, %p1865_p8 }
 0x4e7   : > { %p1631_p7 = pneg %p1630_p5 }
 0x4e9   : > { %p1636_p3 = pnand %p1634_p9, %p1631_p7 }
 0x4eb   : > { %1639 = shalt.err (!%p1636_p3)
}
 0x4ec   : > { %1366 = dma.vmem_to_hbm [thread:$0]  (%p1865_p8), %s1099_s16, 128, %s1945_s6, [#allocation9]  }
 0x4ed   : > { %s1640_s12 = scalar_lea.vmem %s1121_s18, 128  ;;  %p1647_p11 = scmp.lt.s32.totalorder %s1121_s18, %s1121_s18 }
 0x4ee   : > { %p1641_p4 = scmp.ne.s32.totalorder %s1121_s18, %s1640_s12  ;;  %p1648_p12 = scmp.lt.s32.totalorder %s1640_s12, %s1640_s12 }
 0x4f0   : > { %p1642_p6 = pnand %p1641_p4, %p1865_p8  ;;  %p1649_p13 = por %p1648_p12, %p1647_p11 }
 0x4f2   : > { %p1643_p10 = pneg %p1642_p6 }
 0x4f4   : > { %p1650_p0 = pnand %p1649_p13, %p1643_p10 }
 0x4f6   : > { %1653 = shalt.err (!%p1650_p0)
}
 0x4f7   : > { %s1654_s17 = scalar_lea.hbm %s1947_s8, 128 }
 0x4f8   : > { %p1655_p1 = scmp.ne.s32.totalorder %s1947_s8, %s1654_s17  ;;  %p1660_p7 = scmp.lt.u32.totalorder %s1654_s17, %s1947_s8 }
 0x4fa   : > { %p1656_p2 = pnand %p1655_p1, %p1865_p8 }
 0x4fc   : > { %p1657_p5 = pneg %p1656_p2 }
 0x4fe   : > { %p1662_p9 = pnand %p1660_p7, %p1657_p5 }
 0x500   : > { %1665 = shalt.err (!%p1662_p9)
}
 0x501   : > { %1370 = dma.vmem_to_hbm [thread:$0]  (%p1865_p8), %s1121_s18, 128, %s1947_s8, [#allocation12]  }
 0x502   : > { %1683 = dma.done.wait (%p1865_p8), [#allocation12], 256  }
 0x503   : > { %1685 = vsyncadd (%p1865_p8), [#allocation12], 4294967040 }
 0x504 PF: > { %p1392_p3 = scmp.ge.s32.totalorder %s1700_s29, 2  ;;  %p1393_p4 = scmp.eq.s32.totalorder %s1234_s9, 1 }
 0x506   : > { %p1382_p6 = pnand %p1393_p4, %p1392_p3 }
 0x508   : > { %1687 = dma.done.wait (!%p1382_p6), [#allocation9], 128  }
 0x509   : > { %1689 = vsyncadd (!%p1382_p6), [#allocation9], 4294967168  ;;  %s24_s29 = sadd.s32 1, %s1700_s29   ;;  %s1957_s27 = smov %s1696_s28 }
 0x50a   : > { %p21_p10 = scmp.ge.s32.totalorder %s24_s29, 4   ;;  %s1958_s28 = smov %s1960_s10 }
 0x50c   :  { %23 = sbr.rel (!%p21_p10) target bundleno = 5 (0x5), region = 121 }
 0x513   :  { %1146 = vsyncpa [#allocation8], 1 }
 0x514   :  { %1148 = vsyncpa [#allocation8 + $0x1], 1 }
 0x515   :  { %1149 = vsyncpa [#allocation9], 1 }
 0x516   :  { %1151 = vsyncpa [#allocation9 + $0x1], 1 }
 0x517   :  { %1152 = vsyncpa [#allocation12], 1 }

</bundles_post_ra>
